<compile_context>
chip_gen: v5e
topology: v5e:2x2
jax: 0.10.0
libtpu: 0.0.40
codegen_flags: <defaults>
</compile_context>

<pallas_src>
import jax
import jax.numpy as jnp
import numpy as np
from jax.experimental import pallas as pl
from jax.experimental.pallas import tpu as pltpu

# Small synthetic shapes consistent with the forward pass.
B, S, H, V = 2, 8, 32, 512
# Single vocab tile at these shapes (grid of 1).  At real SPLADE vocab
# (~30522) shrink TV (e.g. 256/512) so the grid has many parallel tiles.
TV = 512


def splade_pool_kernel(h_ref, w_ref, b_ref, mask_ref, out_ref):
    # h_ref:    (B*S, H)  f32   fused-batch hidden states (resident)
    # w_ref:    (H, TV)   f32   MLM-head weight tile
    # b_ref:    (1, TV)   f32   MLM-head bias tile
    # mask_ref: (B*S, 1)  f32   attention mask column ({0,1}, resident)
    # out_ref:  (B, TV)   f32   max-pooled sparse vector tile
    bsz, tv = out_ref.shape
    # Scores without bias; bias is seq-invariant so it is added post-max.
    x = jnp.dot(h_ref[...], w_ref[...],
                preferred_element_type=jnp.float32)            # (B*S, TV)
    # Masked positions -> -inf so they never win the max.
    masked = jnp.where(mask_ref[...] > 0.0, x, -jnp.inf)       # (B*S, TV)
    # S == 8 matches the f32 sublane tile, so this reshape is copy-free.
    pooled = jnp.max(masked.reshape(bsz, -1, tv), axis=1)      # (B, TV)
    # Exact hoist of max_s(log1p(relu(x_s + b)) * m_s):
    #   relu/log1p monotone, bias constant over seq, mask in {0,1};
    #   fully-masked rows: relu(-inf + b) = 0 -> log1p(0) = 0.
    out_ref[...] = jnp.log1p(jnp.maximum(pooled + b_ref[...], 0.0))


def splade_sparse_vec(hidden_2d, w, b2d, mask_col):
    """hidden_2d: (B*S, H) f32, w: (H, Vp) f32, b2d: (1, Vp) f32,
       mask_col: (B*S, 1) f32  ->  (B, Vp) f32   (Vp = padded vocab)"""
    vp = w.shape[1]
    n_tiles = pl.cdiv(vp, TV)
    # Footprint-derived VMEM limit (x2 pipeline buffers, generous headroom);
    # well under v7x's 64 MiB here, and scales with the tile at real sizes.
    tile_bytes = 4 * (hidden_2d.size + H * TV + TV + mask_col.size + B * TV)
    vmem_limit = int(min(max(8 * tile_bytes, 8 << 20), 64 << 20))
    return pl.pallas_call(
        splade_pool_kernel,
        out_shape=jax.ShapeDtypeStruct((B, vp), jnp.float32),
        grid_spec=pltpu.PrefetchScalarGridSpec(
            num_scalar_prefetch=0,
            grid=(n_tiles,),
            in_specs=[
                # constant block index -> fetched once, resident across tiles
                pl.BlockSpec((B * S, H), lambda j: (0, 0)),
                # weight / bias tiles cycle along the vocab grid axis
                pl.BlockSpec((H, TV), lambda j: (0, j)),
                pl.BlockSpec((1, TV), lambda j: (0, j)),
                # mask column, also resident
                pl.BlockSpec((B * S, 1), lambda j: (0, 0)),
            ],
            out_specs=pl.BlockSpec((B, TV), lambda j: (0, j)),
        ),
        compiler_params=pltpu.CompilerParams(
            # Vocab tiles are independent; with a single tile this is moot, at
            # real vocab it lets v7x split tiles across its 2 TensorCores.
            dimension_semantics=("parallel",),
            vmem_limit_bytes=vmem_limit),
    )(hidden_2d, w, b2d, mask_col)


@jax.jit
def splade_device(input_ids, attention_mask, token_type_ids, emb, w, b2d):
    # dummy = token_type_ids.sum() * 0.0 (keeps token_type_ids as a live input)
    dummy = jnp.sum(token_type_ids).astype(jnp.float32) * 0.0
    # Synthetic "splade model": embedding lookup + MLM head (head in kernel).
    hidden = jnp.take(emb, input_ids, axis=0)                    # (B, S, H) f32
    hidden_2d = hidden.reshape(B * S, H)                         # batch folded into M
    mask_col = attention_mask.astype(jnp.float32).reshape(B * S, 1)
    # Pad vocab to a multiple of TV with zero weight + zero bias: padded
    # columns are exactly 0 after relu/log1p -> never enter the nonzero output.
    vp = pl.cdiv(V, TV) * TV
    w_p = jnp.pad(w, ((0, 0), (0, vp - V))) if vp != V else w
    b_p = jnp.pad(b2d, ((0, 0), (0, vp - V))) if vp != V else b2d
    sparse_vec = splade_sparse_vec(hidden_2d, w_p, b_p, mask_col)[:, :V]
    return sparse_vec, dummy


def splade_export_forward(input_ids, attention_mask, token_type_ids, params):
    emb, w, b2d = params
    sparse_vec, dummy = splade_device(input_ids, attention_mask,
                                      token_type_ids, emb, w, b2d)
    # TODO(synk): dynamic-shape torch.nonzero has no static-shape Pallas
    # equivalent; index extraction runs host-side on the kernel output.
    sv, d = jax.device_get((sparse_vec, dummy))   # single host transfer
    nz = sv.nonzero()
    values = sv[nz] + float(d)
    return nz[1], values, sparse_vec


if __name__ == "__main__":
    key = jax.random.PRNGKey(0)
    k_emb, k_w, k_b, k_ids = jax.random.split(key, 4)

    # Deterministic synthetic parameters.
    emb = jax.random.normal(k_emb, (V, H), dtype=jnp.float32) * 0.5
    w = jax.random.normal(k_w, (H, V), dtype=jnp.float32) * 0.2
    b2d = jax.random.normal(k_b, (1, V), dtype=jnp.float32) * 0.1

    # Deterministic synthetic tokenizer outputs.
    input_ids = jax.random.randint(k_ids, (B, S), 0, V, dtype=jnp.int32)
    attention_mask = jnp.array(
        [[1, 1, 1, 1, 1, 1, 1, 1],
         [1, 1, 1, 1, 1, 0, 0, 0]], dtype=jnp.int32)
    token_type_ids = jnp.zeros_like(input_ids)

    vocab_idx, values, sparse_vec = splade_export_forward(
        input_ids, attention_mask, token_type_ids, (emb, w, b2d))

    # Pure-JAX f32 reference for the kernel hot path (exact module semantics).
    hidden_ref = jnp.take(emb, input_ids, axis=0)
    logits_ref = jnp.einsum("bsh,hv->bsv", hidden_ref, w,
                            preferred_element_type=jnp.float32) + b2d[0]
    ref = jnp.max(jnp.log1p(jnp.maximum(logits_ref, 0.0))
                  * attention_mask.astype(jnp.float32)[..., None], axis=1)
    # f32 operands everywhere; tolerance only covers matmul accumulation-order
    # / default-precision differences between XLA and the MXU path.
    np.testing.assert_allclose(np.asarray(sparse_vec), np.asarray(ref),
                               rtol=1e-2, atol=1e-2)

    jax.block_until_ready(sparse_vec)
    print("KERNEL_OK")
</pallas_src>

<mosaic_0001>
module attributes {stable_mosaic.version = 11 : i64} {
  func.func @splade_pool_kernel(%arg0: i32, %arg1: memref<16x32xf32, #tpu.memory_space<vmem>>, %arg2: memref<32x512xf32, #tpu.memory_space<vmem>>, %arg3: memref<1x512xf32, #tpu.memory_space<vmem>>, %arg4: memref<16x1xf32, #tpu.memory_space<vmem>>, %arg5: memref<2x512xf32, #tpu.memory_space<vmem>>) attributes {dimension_semantics = [#tpu.dimension_semantics<parallel>], iteration_bounds = array<i64: 1>, scalar_prefetch = 0 : i64, scratch_operands = 0 : i64, tpu.core_type = #tpu.core_type<tc>, window_params = [{pipeline_mode = #tpu.pipeline_mode<synchronous>, transform_indices = @transform_0, window_bounds = array<i64: 16, 32>}, {transform_indices = @transform_1, window_bounds = array<i64: 32, 512>}, {transform_indices = @transform_2, window_bounds = array<i64: 1, 512>}, {pipeline_mode = #tpu.pipeline_mode<synchronous>, transform_indices = @transform_3, window_bounds = array<i64: 16, 1>}, {transform_indices = @transform_4, window_bounds = array<i64: 2, 512>}]} {
    %c0 = arith.constant 0 : index
    %c0_0 = arith.constant 0 : index
    %0 = vector.load %arg1[%c0, %c0_0] : memref<16x32xf32, #tpu.memory_space<vmem>>, vector<16x32xf32>
    %c0_1 = arith.constant 0 : index
    %c0_2 = arith.constant 0 : index
    %1 = vector.load %arg2[%c0_1, %c0_2] : memref<32x512xf32, #tpu.memory_space<vmem>>, vector<32x512xf32>
    %cst = arith.constant dense<0.000000e+00> : vector<16x512xf32>
    %2 = tpu.matmul %0, %1, %cst {dimension_numbers = #tpu.dot_dimension_numbers<[1], [0], [0], [1], [0, 0, 1, 1], [], []>} : vector<16x32xf32>, vector<32x512xf32>, vector<16x512xf32> -> vector<16x512xf32>
    %c0_3 = arith.constant 0 : index
    %c0_4 = arith.constant 0 : index
    %3 = vector.load %arg4[%c0_3, %c0_4] : memref<16x1xf32, #tpu.memory_space<vmem>>, vector<16x1xf32>
    %cst_5 = arith.constant 0.000000e+00 : f32
    %4 = vector.broadcast %cst_5 : f32 to vector<16x1xf32>
    %5 = arith.cmpf ogt, %3, %4 : vector<16x1xf32>
    %cst_6 = arith.constant 0xFF800000 : f32
    %6 = vector.shape_cast %5 : vector<16x1xi1> to vector<16x1xi1>
    %7 = vector.broadcast %6 : vector<16x1xi1> to vector<16x512xi1>
    %8 = vector.broadcast %cst_6 : f32 to vector<16x512xf32>
    %9 = arith.select %7, %2, %8 : vector<16x512xi1>, vector<16x512xf32>
    %10 = vector.shape_cast %9 : vector<16x512xf32> to vector<2x8x512xf32>
    %cst_7 = arith.constant dense<0xFF800000> : vector<2x512xf32>
    %11 = vector.multi_reduction <maximumf>, %10, %cst_7 [1] : vector<2x8x512xf32> to vector<2x512xf32>
    %c0_8 = arith.constant 0 : index
    %c0_9 = arith.constant 0 : index
    %12 = vector.load %arg3[%c0_8, %c0_9] : memref<1x512xf32, #tpu.memory_space<vmem>>, vector<1x512xf32>
    %13 = vector.broadcast %12 : vector<1x512xf32> to vector<2x512xf32>
    %14 = arith.addf %11, %13 : vector<2x512xf32>
    %cst_10 = arith.constant 0.000000e+00 : f32
    %15 = vector.broadcast %cst_10 : f32 to vector<2x512xf32>
    %16 = arith.maximumf %14, %15 : vector<2x512xf32>
    %17 = math.log1p %16 : vector<2x512xf32>
    %c0_11 = arith.constant 0 : index
    %c0_12 = arith.constant 0 : index
    %18 = vector.load %arg5[%c0_11, %c0_12] : memref<2x512xf32, #tpu.memory_space<vmem>>, vector<2x512xf32>
    tpu.vector_store %arg5[%c0_11, %c0_12], %17 {strides = array<i32>} : memref<2x512xf32, #tpu.memory_space<vmem>>, vector<2x512xf32>,
    return
  }
  func.func @transform_0(%arg0: i32) -> (i32, i32) {
    %c0_i32 = arith.constant 0 : i32
    %c0_i32_0 = arith.constant 0 : i32
    %c0_i32_1 = arith.constant 0 : i32
    return %c0_i32, %c0_i32_0 : i32, i32
  }
  func.func @transform_1(%arg0: i32) -> (i32, i32) {
    %c0_i32 = arith.constant 0 : i32
    %c0_i32_0 = arith.constant 0 : i32
    return %c0_i32, %arg0 : i32, i32
  }
  func.func @transform_2(%arg0: i32) -> (i32, i32) {
    %c0_i32 = arith.constant 0 : i32
    %c0_i32_0 = arith.constant 0 : i32
    return %c0_i32, %arg0 : i32, i32
  }
  func.func @transform_3(%arg0: i32) -> (i32, i32) {
    %c0_i32 = arith.constant 0 : i32
    %c0_i32_0 = arith.constant 0 : i32
    %c0_i32_1 = arith.constant 0 : i32
    return %c0_i32, %c0_i32_0 : i32, i32
  }
  func.func @transform_4(%arg0: i32) -> (i32, i32) {
    %c0_i32 = arith.constant 0 : i32
    %c0_i32_0 = arith.constant 0 : i32
    return %c0_i32, %arg0 : i32, i32
  }
}

</mosaic_0001>

<bundles_post_ra>
// kernel: splade_device.1
= control target key start
LH: loop header
LB: loop body
LE: loop exit
PB: predicated region body
PF: predicated region fallthrough
CT: control target
= control target key end

     0   :  { %vm36_vm0 = vcmask 261120   ;;  %s575_s0 = inlined_call_operand.vmem [shape: f32[16,32], index: 0, kind: input, shape index: {}]   ;;  %s576_s1 = inlined_call_operand.vmem [shape: f32[32,512], index: 1, kind: input, shape index: {}]   ;;  %s577_s2 = inlined_call_operand.vmem [shape: f32[1,512], index: 2, kind: input, shape index: {}]   ;;  %s578_s3 = inlined_call_operand.vmem [shape: f32[16,1], index: 3, kind: input, shape index: {}]   ;;  %s579_s4 = inlined_call_operand.hbm [shape: f32[2,512], index: 4, kind: output, shape index: {}]  }
   0x1   :  { %v32_v0 = vld [vmem:[%s576_s1 + $0x60] sm:$0xff]  ;;  %v33_v1 = vld [vmem:[%s576_s1 + $0x68] sm:$0xff]  ;;  %v34_v2 = vld [vmem:[%s576_s1 + $0x70] sm:$0xff] }
   0x2   :  { %55 = vmatpush.msra.mxu0 %v32_v0  ;;  %78 = vmatpush.msra.mxu1 %v33_v1  ;;  %v35_v3 = vld [vmem:[%s576_s1 + $0x78] sm:$0xff]  ;;  %v28_v4 = vld [vmem:[%s576_s1 + $0x40] sm:$0xff]  ;;  %v29_v5 = vld [vmem:[%s576_s1 + $0x48] sm:$0xff] }
   0x3   :  { %101 = vmatpush.msra.mxu2 %v34_v2  ;;  %124 = vmatpush.msra.mxu3 %v35_v3  ;;  %v30_v6 = vld [vmem:[%s576_s1 + $0x50] sm:$0xff]  ;;  %v31_v7 = vld [vmem:[%s576_s1 + $0x58] sm:$0xff]  ;;  %v24_v8 = vld [vmem:[%s576_s1 + $0x20] sm:$0xff] }
   0x4   :  { %56 = vmatpush.msra.mxu0 %v28_v4  ;;  %79 = vmatpush.msra.mxu1 %v29_v5  ;;  %v25_v9 = vld [vmem:[%s576_s1 + $0x28] sm:$0xff]  ;;  %v26_v10 = vld [vmem:[%s576_s1 + $0x30] sm:$0xff]  ;;  %v27_v11 = vld [vmem:[%s576_s1 + $0x38] sm:$0xff] }
   0x5   :  { %102 = vmatpush.msra.mxu2 %v30_v6  ;;  %125 = vmatpush.msra.mxu3 %v31_v7  ;;  %v20_v12 = vld [vmem:[%s576_s1] sm:$0xff]  ;;  %v21_v13 = vld [vmem:[%s576_s1 + $0x8] sm:$0xff]  ;;  %v22_v14 = vld [vmem:[%s576_s1 + $0x10] sm:$0xff] }
   0x6   :  { %57 = vmatpush.msra.mxu0 %v24_v8  ;;  %80 = vmatpush.msra.mxu1 %v25_v9  ;;  %v23_v15 = vld [vmem:[%s576_s1 + $0x18] sm:$0xff]  ;;  %v136_v16 = vld [vmem:[%s578_s3 + $0x8] sm:$0xff]  ;;  %v18_v17 = vld [vmem:[%s575_s0] sm:$0xff] }
   0x7   :  { %103 = vmatpush.msra.mxu2 %v26_v10  ;;  %126 = vmatpush.msra.mxu3 %v27_v11  ;;  %vm138_vm1 = vcmp.gt.f32.partialorder %v136_v16, 0.0 }
   0x8   :  { %9 = vsyncpa [#allocation3], 0  ;;  %58 = vmatpush.msra.mxu0 %v20_v12  ;;  %81 = vmatpush.msra.mxu1 %v21_v13  ;;  %v410_v18 = vmov 0   ;;  %v135_v20 = vld [vmem:[%s578_s3] sm:$0xff]  ;;  %v19_v21 = vld [vmem:[%s575_s0 + $0x8] sm:$0xff]  ;;  %vm319_vm11 = vcmask 1045508  }
   0x9   :  { %104 = vmatpush.msra.mxu2 %v22_v14  ;;  %127 = vmatpush.msra.mxu3 %v23_v15  ;;  %v140_v19 = vsel %vm138_vm1, 1, %v410_v18  ;;  %vm137_vm2 = vcmp.gt.f32.partialorder %v135_v20, 0.0  ;;  %v205_v2 = vld [vmem:[%s577_s2] sm:$0xf]  ;;  %vm317_vm14 = vcmask 1041408   ;;  %vm321_vm15 = vcmask 1043456  }
   0xa   :  { %357 = vmatmul.msk.f32.vlgmr.msra.gmra.mxu0 %vm36_vm0, %v18_v17  ;;  %359 = vmatmul.msk.f32.vlgmr.msra.gmra.mxu1 %vm36_vm0, %v18_v17  ;;  %v139_v22 = vsel %vm137_vm2, 1, %v410_v18  ;;  %v209_v6 = vperm.slane %v205_v2, 2  ;;  %v210_v10 = vperm.slane %v205_v2, 3  ;;  %v208_v15 = vperm.slane %v205_v2, 1  ;;  %s411_s2 = smov [#allocation2]   ;;  %s348_s5 = sshll.u32 %s579_s4, 4  ;;  %s349_s5 = int_to_ptr.hbm [resolvable:$true] %s348_s5 }
   0xb   :  { %361 = vmatmul.msk.f32.vlgmr.msra.gmra.mxu2 %vm36_vm0, %v18_v17  ;;  %363 = vmatmul.msk.f32.vlgmr.msra.gmra.mxu3 %vm36_vm0, %v18_v17  ;;  %vm333_vm1 = vcmask 1043459   ;;  %vm335_vm2 = vcmask 1045509   ;;  %s346_s28 = sshll.u32 %s411_s2, 4  ;;  %s347_s28 = int_to_ptr.vmem [resolvable:$true] %s346_s28 }
   0xc   :  { %367 = vset.pattern.permute.xlu0 %v410_v18 }
   0xd   :  { %145 = vperm.xlu0 %367, %v140_v19  }
  0x12   :  { %358 = vmatmul.msk.f32.gmra.mxu0 %vm36_vm0, %v19_v21  ;;  %360 = vmatmul.msk.f32.gmra.mxu1 %vm36_vm0, %v19_v21 }
  0x13   :  { %362 = vmatmul.msk.f32.gmra.mxu2 %vm36_vm0, %v19_v21  ;;  %364 = vmatmul.msk.f32.gmra.mxu3 %vm36_vm0, %v19_v21  ;;  %vm331_vm0 = vcmask 1041409  }
  0x15   :  { %142 = vperm.xlu0 %367, %v139_v22   ;;  %v207_v22 = vperm.slane %v205_v2, 0 }
  0x7f   :  { %v146_v23 = vpop.permute.xlu0 %145 }
  0x80   :  { %vm148_vm4 = vcmp.eq.s32.totalorder %v146_v23, 1 }
  0x87   :  { %v143_v24 = vpop.permute.xlu0 %142  ;;  %v60_v25 = vpop.f32.mrf.mxu0 }
  0x88   :  { %vm147_vm3 = vcmp.eq.s32.totalorder %v143_v24, 1  ;;  %v83_v26 = vpop.f32.mrf.mxu1 }
  0x89   :  { %v150_v27 = vsel %vm147_vm3, %v83_v26, -inf  ;;  %v149_v28 = vsel %vm147_vm3, %v60_v25, -inf }
  0x8a   :  { %v163_v29 = vrot.slane %v150_v27, 4  ;;  %v157_v35 = vrot.slane %v149_v28, 4 }
  0x8c   :  { %v164_v39 = vmax.f32 %v150_v27, %v163_v29  ;;  %v158_v46 = vmax.f32 %v149_v28, %v157_v35 }
  0x8e   :  { %v106_v30 = vpop.f32.mrf.mxu2  ;;  %v129_v31 = vpop.f32.mrf.mxu3  ;;  %v165_v49 = vrot.slane %v164_v39, 2  ;;  %v159_v56 = vrot.slane %v158_v46, 2 }
  0x8f   :  { %v151_v32 = vsel %vm147_vm3, %v106_v30, -inf  ;;  %v152_v33 = vsel %vm147_vm3, %v129_v31, -inf  ;;  %v63_v34 = vpop.f32.mrf.mxu0  ;;  %vm337_vm3 = vcmask 1047559  }
  0x90   :  { %v169_v36 = vrot.slane %v151_v32, 4  ;;  %v175_v37 = vrot.slane %v152_v33, 4  ;;  %v86_v38 = vpop.f32.mrf.mxu1  ;;  %v153_v40 = vsel %vm148_vm4, %v63_v34, -inf  ;;  %v166_v58 = vmax.f32 %v164_v39, %v165_v49 }
  0x91   :  { %v154_v41 = vsel %vm148_vm4, %v86_v38, -inf  ;;  %v181_v44 = vrot.slane %v153_v40, 4  ;;  %v160_v1 = vmax.f32 %v158_v46, %v159_v56 }
  0x92   :  { %v170_v42 = vmax.f32 %v151_v32, %v169_v36  ;;  %v176_v43 = vmax.f32 %v152_v33, %v175_v37  ;;  %v187_v45 = vrot.slane %v154_v41, 4  ;;  %v167_v3 = vrot.slane %v166_v58, 1 }
  0x93   :  { %v182_v52 = vmax.f32 %v153_v40, %v181_v44  ;;  %v161_v12 = vrot.slane %v160_v1, 1 }
  0x94   :  { %v171_v47 = vrot.slane %v170_v42, 2  ;;  %v177_v48 = vrot.slane %v176_v43, 2  ;;  %v188_v50 = vmax.f32 %v154_v41, %v187_v45  ;;  %v168_v14 = vmax.f32 %v166_v58, %v167_v3 }
  0x95   :  { %v183_v60 = vrot.slane %v182_v52, 2  ;;  %v162_v21 = vmax.f32 %v160_v1, %v161_v12 }
  0x96   :  { %v172_v51 = vmax.f32 %v170_v42, %v171_v47  ;;  %v109_v53 = vpop.f32.mrf.mxu2  ;;  %v178_v54 = vmax.f32 %v176_v43, %v177_v48  ;;  %v189_v55 = vrot.slane %v188_v50, 2  ;;  %v132_v62 = vpop.f32.mrf.mxu3  ;;  %v216_v24 = vadd.f32 %v208_v15, %v168_v14 }
  0x97   :  { %v155_v57 = vsel %vm148_vm4, %v109_v53, -inf  ;;  %v156_v4 = vsel %vm148_vm4, %v132_v62, -inf  ;;  %v184_v7 = vmax.f32 %v182_v52, %v183_v60  ;;  %v215_v30 = vadd.f32 %v207_v22, %v162_v21 }
  0x98   :  { %v173_v59 = vrot.slane %v172_v51, 1  ;;  %v190_v61 = vmax.f32 %v188_v50, %v189_v55  ;;  %v179_v63 = vrot.slane %v178_v54, 1  ;;  %v193_v0 = vrot.slane %v155_v57, 4 }
  0x99   :  { %v199_v13 = vrot.slane %v156_v4, 4  ;;  %v185_v17 = vrot.slane %v184_v7, 1  ;;  %v224_v34 = vmax.f32 %v216_v24, 0.0  ;;  %v520_v40 = vmax.f32 %v215_v30, 0.0 }
  0x9a   :  { %v174_v5 = vmax.f32 %v172_v51, %v173_v59  ;;  %v191_v8 = vrot.slane %v190_v61, 1  ;;  %v180_v9 = vmax.f32 %v178_v54, %v179_v63  ;;  %v194_v11 = vmax.f32 %v155_v57, %v193_v0 }
  0x9b   :  { %v200_v23 = vmax.f32 %v156_v4, %v199_v13  ;;  %v186_v26 = vmax.f32 %v184_v7, %v185_v17  ;;  %v240_v42 = vadd.f32 1.0, %v224_v34  ;;  %v231_v48 = vadd.f32 1.0, %v520_v40 }
  0x9c   :  { %v217_v16 = vadd.f32 %v209_v6, %v174_v5  ;;  %v192_v18 = vmax.f32 %v190_v61, %v191_v8  ;;  %v195_v19 = vrot.slane %v194_v11, 2  ;;  %v218_v20 = vadd.f32 %v210_v10, %v180_v9 }
  0x9d   :  { %v201_v33 = vrot.slane %v200_v23, 2  ;;  %v219_v36 = vadd.f32 %v207_v22, %v186_v26  ;;  %v243_v49 = vmul.f32 -0.5, %v224_v34  ;;  %v246_v50 = vand.u32 2147483647, %v224_v34 }
  0x9e   :  { %v512_v25 = vmax.f32 %v217_v16, 0.0  ;;  %v220_v27 = vadd.f32 %v208_v15, %v192_v18  ;;  %v196_v28 = vmax.f32 %v194_v11, %v195_v19  ;;  %v514_v29 = vmax.f32 %v218_v20, 0.0 }
  0x9f   :  { %v202_v39 = vmax.f32 %v200_v23, %v201_v33  ;;  %v523_v45 = vmax.f32 %v219_v36, 0.0  ;;  %v234_v60 = vmul.f32 -0.5, %v520_v40  ;;  %v244_v63 = vadd.f32 1.0, %v243_v49 }
  0xa0   :  { %v516_v31 = vmax.f32 %v220_v27, 0.0  ;;  %v197_v32 = vrot.slane %v196_v28, 1  ;;  %v249_v35 = vadd.f32 1.0, %v512_v25  ;;  %v258_v37 = vadd.f32 1.0, %v514_v29 }
  0xa1   :  { %v203_v44 = vrot.slane %v202_v39, 1  ;;  %v252_v53 = vmul.f32 -0.5, %v512_v25  ;;  %v255_v54 = vand.u32 2147483647, %v512_v25  ;;  %v267_v55 = vadd.f32 1.0, %v523_v45 }
  0xa2   :  { %v198_v38 = vmax.f32 %v196_v28, %v197_v32  ;;  %v276_v41 = vadd.f32 1.0, %v516_v31  ;;  %368 = vlog2.f32 %v249_v35  ;;  %v261_v56 = vmul.f32 -0.5, %v514_v29 }
  0xa3   :  { %370 = vlog2.f32 %v258_v37  ;;  %v204_v47 = vmax.f32 %v202_v39, %v203_v44  ;;  %v279_v57 = vmul.f32 -0.5, %v516_v31  ;;  %vm532_vm5 = vcmp.lt.f32.partialorder %v246_v50, 0.0004427343 }
  0xa4   :  { %v221_v43 = vadd.f32 %v209_v6, %v198_v38  ;;  %372 = vlog2.f32 %v276_v41  ;;  %v264_v1 = vand.u32 2147483647, %v514_v29  ;;  %v253_v3 = vadd.f32 1.0, %v252_v53 }
  0xa5   :  { %374 = vlog2.f32 %v240_v42  ;;  %v222_v52 = vadd.f32 %v210_v10, %v204_v47  ;;  %vm537_vm6 = vcmp.lt.f32.partialorder %v255_v54, 0.0004427343  ;;  %v262_v7 = vadd.f32 1.0, %v261_v56 }
  0xa6   :  { %v229_v46 = vmax.f32 %v221_v43, 0.0  ;;  %v280_v8 = vadd.f32 1.0, %v279_v57  ;;  %v282_v12 = vand.u32 2147483647, %v516_v31  ;;  %v245_v15 = vmul.f32 %v244_v63, %v224_v34 }
  0xa7   :  { %v230_v61 = vmax.f32 %v222_v52, 0.0  ;;  %v270_v17 = vmul.f32 -0.5, %v523_v45  ;;  %v254_v20 = vmul.f32 %v253_v3, %v512_v25  ;;  %vm544_vm7 = vcmp.lt.f32.partialorder %v264_v1, 0.0004427343 }
  0xa8   :  { %v285_v51 = vadd.f32 1.0, %v229_v46  ;;  %v288_v58 = vmul.f32 -0.5, %v229_v46  ;;  %v369_v59 = vpop.eup %368  ;;  %v291_v13 = vand.u32 2147483647, %v229_v46  ;;  %v263_v24 = vmul.f32 %v262_v7, %v514_v29 }
  0xa9   :  { %v371_v62 = vpop.eup %370  ;;  %v294_v5 = vadd.f32 1.0, %v230_v61  ;;  %v297_v10 = vmul.f32 -0.5, %v230_v61  ;;  %v251_v11 = vmul.f32 0.6931472, %v369_v59  ;;  %v281_v26 = vmul.f32 %v280_v8, %v516_v31 }
  0xaa   :  { %376 = vlog2.f32 %v285_v51  ;;  %v373_v2 = vpop.eup %372  ;;  %v289_v9 = vadd.f32 1.0, %v288_v58  ;;  %v260_v16 = vmul.f32 0.6931472, %v371_v62  ;;  %vm552_vm8 = vcmp.lt.f32.partialorder %v282_v12, 0.0004427343 }
  0xab   :  { %378 = vlog2.f32 %v231_v48  ;;  %v375_v6 = vpop.eup %374  ;;  %v278_v18 = vmul.f32 0.6931472, %v373_v2  ;;  %v298_v28 = vadd.f32 1.0, %v297_v10  ;;  %v257_v32 = vsel %vm537_vm6, %v254_v20, %v251_v11 }
  0xac   :  { %380 = vlog2.f32 %v267_v55  ;;  %v242_v19 = vmul.f32 0.6931472, %v375_v6  ;;  %v290_v27 = vmul.f32 %v289_v9, %v229_v46  ;;  %vm556_vm9 = vcmp.lt.f32.partialorder %v291_v13, 0.0004427343 }
  0xad   :  { %382 = vlog2.f32 %v294_v5  ;;  %v300_v34 = vand.u32 2147483647, %v230_v61  ;;  %v266_v29 = vsel %vm544_vm7, %v263_v24, %v260_v16  ;;  %v271_v35 = vadd.f32 1.0, %v270_v17 }
  0xae   :  { %v284_v31 = vsel %vm552_vm8, %v281_v26, %v278_v18  ;;  %v235_v38 = vadd.f32 1.0, %v234_v60  ;;  %v237_v39 = vand.u32 2147483647, %v520_v40  ;;  %v248_v41 = vsel %vm532_vm5, %v245_v15, %v242_v19 }
  0xaf   :  { %v273_v42 = vand.u32 2147483647, %v523_v45  ;;  %v312_v43 = vrot.slane %v257_v32, 4  ;;  %v299_v47 = vmul.f32 %v298_v28, %v230_v61  ;;  %v313_v48 = vrot.slane %v266_v29, 2 }
  0xb0   :  { %v377_v14 = vpop.eup %376  ;;  %vm301_vm10 = vcmp.lt.f32.partialorder %v300_v34, 0.0004427343  ;;  %v314_v49 = vrot.slane %v284_v31, 6  ;;  %v272_v52 = vmul.f32 %v271_v35, %v523_v45  ;;  %v311_v54 = vrot.slane %v248_v41, 6 }
  0xb1   :  { %v287_v22 = vmul.f32 0.6931472, %v377_v14  ;;  %v379_v23 = vpop.eup %378  ;;  %vm274_vm12 = vcmp.lt.f32.partialorder %v273_v42, 0.0004427343  ;;  %v236_v56 = vmul.f32 %v235_v38, %v520_v40  ;;  %vm238_vm13 = vcmp.lt.f32.partialorder %v237_v39, 0.0004427343 }
  0xb2   :  { %v381_v30 = vpop.eup %380  ;;  %v233_v51 = vmul.f32 0.6931472, %v379_v23  ;;  %v320_v58 = vsel %vm319_vm11, %v312_v43, %v313_v48 }
  0xb3   :  { %v293_v36 = vsel %vm556_vm9, %v290_v27, %v287_v22  ;;  %v383_v37 = vpop.eup %382  ;;  %v269_v44 = vmul.f32 0.6931472, %v381_v30 }
  0xb4   :  { %v296_v46 = vmul.f32 0.6931472, %v383_v37  ;;  %v315_v50 = vrot.slane %v293_v36, 4  ;;  %v239_v61 = vsel %vm238_vm13, %v236_v56, %v233_v51 }
  0xb5   :  { %v275_v57 = vsel %vm274_vm12, %v272_v52, %v269_v44  ;;  %v318_v63 = vsel %vm317_vm14, %v239_v61, %v311_v54 }
  0xb6   :  { %v302_v53 = vsel %vm301_vm10, %v299_v47, %v296_v46  ;;  %v323_v59 = vsel %vm317_vm14, %v275_v57, %v314_v49  ;;  %v322_v45 = vsel %vm321_vm15, %v318_v63, %v320_v58 }
  0xb7   :  { %v316_v55 = vrot.slane %v302_v53, 2 }
  0xb9   :  { %v324_v60 = vsel %vm319_vm11, %v315_v50, %v316_v55 }
  0xba   :  { %v325_v62 = vsel %vm321_vm15, %v323_v59, %v324_v60 }
  0xbb   :  { %v330_v0 = vrot.slane %v325_v62, 7 }
  0xbd   :  { %v332_v40 = vsel %vm331_vm0, %v330_v0, %v322_v45 }
  0xbe   :  { %v334_v1 = vsel %vm333_vm1, %v330_v0, %v332_v40 }
  0xbf   :  { %v336_v2 = vsel %vm335_vm2, %v330_v0, %v334_v1 }
  0xc0   :  { %v338_v3 = vsel %vm337_vm3, %v330_v0, %v336_v2 }
  0xc1   :  { %340 = vst [vmem:[#allocation2] sm:$0xff] %v338_v3 }
  0xc2   :  { %351 = dma.vmem_to_hbm [thread:$0]  %s347_s28, 128, %s349_s5, [#allocation3]  }
  0xc3   :  { %408 = dma.done.wait [#allocation3], 128  }
  0xc4   :  { %409 = vsyncadd [#allocation3], 4294967168 }
  0xc5   :  { %356 = vsyncpa [#allocation3], 1 }

</bundles_post_ra>
